<compile_context>
chip_gen: v7x
topology: tpu7x:2x2x1
jax: 0.10.0
libtpu: 0.0.40
codegen_flags: <defaults>
</compile_context>

<pallas_src>
import functools

import jax
import jax.numpy as jnp
from jax.experimental import pallas as pl
from jax.experimental.pallas import tpu as pltpu


def _round_up(x, m):
    return ((x + m - 1) // m) * m


def _loss_kernel(regs_ref, y_ref, logits_ref, out_ref, acc_nll_ref, acc_reg_ref,
                 *, n_batch, tile_b, tiles_per_core):
    c = pl.program_id(0)          # core split ("parallel")
    i = pl.program_id(1)          # batch tiles for this core ("arbitrary")
    g = c * tiles_per_core + i    # unclamped global tile index (used for masking)

    @pl.when(i == 0)
    def _():
        acc_nll_ref[...] = jnp.zeros_like(acc_nll_ref)
        acc_reg_ref[...] = jnp.zeros_like(acc_reg_ref)

    # ---- pitch CrossEntropy: per-row NLL, accumulated as a vector ----------
    x = logits_ref[...]                                    # (tb, C_pad) native dtype
    m = jnp.max(x, axis=-1, keepdims=True)                 # exact in native dtype
    xs = x.astype(jnp.float32) - m.astype(jnp.float32)     # shifted logits, f32
    lse = jnp.log(jnp.sum(jnp.exp(xs), axis=-1, keepdims=True))        # (tb, 1)

    tgt = y_ref[...]                                       # (tb, 1) int32
    classes = jax.lax.broadcasted_iota(jnp.int32, xs.shape, 1)
    tgt_shift = jnp.sum(jnp.where(classes == tgt, xs, 0.0),
                        axis=-1, keepdims=True)            # (tb, 1), = logit_t - m
    nll = lse - tgt_shift                                  # (tb, 1); m cancels

    # mask rows of padded / clamped (out-of-range) tiles out of the sum
    row = g * tile_b + jax.lax.broadcasted_iota(jnp.int32, (tile_b, 1), 0)
    acc_nll_ref[...] += jnp.where(row < n_batch, nll, 0.0)

    # ---- step/duration mse + positive pressure (lane-dense (4, tb) tile) ---
    preds = regs_ref[0:2, :]                               # [step_pred, dur_pred]
    ys = regs_ref[2:4, :]                                  # [step_y,   dur_y  ]
    pp = (ys - preds) ** 2 + 10.0 * jnp.maximum(-preds, 0.0)           # (2, tb)
    col = g * tile_b + jax.lax.broadcasted_iota(jnp.int32, (2, tile_b), 1)
    acc_reg_ref[...] += jnp.where(col < n_batch, pp, 0.0)

    # ---- per-core finalize: reduce accumulators once, write lane-dense row -
    @pl.when(i == tiles_per_core - 1)
    def _():
        ce = jnp.sum(acc_nll_ref[...])
        st = jnp.sum(acc_reg_ref[0:1, :])
        du = jnp.sum(acc_reg_ref[1:2, :])
        lane = jax.lax.broadcasted_iota(jnp.int32, (1, 8, 128), 2)
        out_ref[...] = (jnp.where(lane == 0, ce, 0.0)
                        + jnp.where(lane == 1, st, 0.0)
                        + jnp.where(lane == 2, du, 0.0))


def my_loss(weight, pitch_logits, pitch_y, step_pred, step_y, dur_pred, dur_y,
            *, tile_b=None, num_cores=2):
    B, C = pitch_logits.shape
    itemsize = jnp.dtype(pitch_logits.dtype).itemsize

    # lane-dense class axis: pad to a multiple of 128 with a finite big-negative
    C_pad = _round_up(C, 128)
    if C_pad != C:
        pitch_logits = jnp.pad(pitch_logits, ((0, 0), (0, C_pad - C)),
                               constant_values=-1e30)

    # batch tile: multiple of 128 rows (covers all sublane packings), sized so
    # double-buffered native logits + f32 working temps fit a v7x-safe budget.
    if tile_b is None:
        budget = 16 * 1024 * 1024
        bytes_per_row = C_pad * (2 * itemsize + 16) + 64
        tb = max(128, (budget // bytes_per_row) // 128 * 128)
    else:
        tb = max(128, _round_up(tile_b, 128))
    tb = min(tb, _round_up(B, 128))

    total_tiles = pl.cdiv(B, tb)
    n_cores = max(1, min(num_cores, total_tiles))
    tiles_per_core = pl.cdiv(total_tiles, n_cores)
    grid = (n_cores, tiles_per_core)
    B_pad = total_tiles * tb

    last_tile = total_tiles - 1

    def _tile(c, i):
        # clamp the last core's overhang; overhang tiles are fully masked in-kernel
        return jnp.minimum(c * tiles_per_core + i, last_tile)

    # pack the four small regression tensors into one lane-dense padded slab;
    # zero padding contributes exactly 0 to mse + positive pressure (and is
    # masked anyway).
    regs = jnp.stack([step_pred, dur_pred, step_y, dur_y], axis=0)
    regs = regs.astype(jnp.float32)
    regs = jnp.pad(regs, ((0, 0), (0, B_pad - B)))

    cost = pl.CostEstimate(
        flops=int(6 * B_pad * C_pad + 24 * B_pad),
        transcendentals=int(B_pad * C_pad + B_pad),
        bytes_accessed=int(B_pad * C_pad * itemsize + 4 * B_pad + 16 * B_pad
                           + n_cores * 8 * 128 * 4),
    )

    kernel = functools.partial(_loss_kernel, n_batch=B, tile_b=tb,
                               tiles_per_core=tiles_per_core)

    partials = pl.pallas_call(
        kernel,
        out_shape=jax.ShapeDtypeStruct((n_cores, 8, 128), jnp.float32),
        grid=grid,
        in_specs=[
            pl.BlockSpec((4, tb), lambda c, i: (0, _tile(c, i))),        # regs
            pl.BlockSpec((tb, 1), lambda c, i: (_tile(c, i), 0)),        # pitch_y
            pl.BlockSpec((tb, C_pad), lambda c, i: (_tile(c, i), 0)),    # logits
        ],
        out_specs=pl.BlockSpec((1, 8, 128), lambda c, i: (c, 0, 0)),
        scratch_shapes=[
            pltpu.VMEM((tb, 1), jnp.float32),    # CE partial sums (per row)
            pltpu.VMEM((2, tb), jnp.float32),    # step/dur partial sums (per lane)
        ],
        compiler_params=pltpu.CompilerParams(
            dimension_semantics=("parallel", "arbitrary"),
            vmem_limit_bytes=48 * 1024 * 1024,
        ),
        cost_estimate=cost,
    )(
        regs,
        pitch_y.astype(jnp.int32).reshape(B, 1),
        pitch_logits,   # native dtype; f32 math happens inside the kernel
    )

    # trivial scalar epilogue (divide by true B + weighted combine)
    w = weight.astype(jnp.float32)
    ce_sum = jnp.sum(partials[:, 0, 0])
    st_sum = jnp.sum(partials[:, 0, 1])
    du_sum = jnp.sum(partials[:, 0, 2])
    return (w[0] * ce_sum + w[1] * st_sum + w[2] * du_sum) / jnp.float32(B)


def _reference(weight, pitch_logits, pitch_y, step_pred, step_y, dur_pred, dur_y):
    logprobs = jax.nn.log_softmax(pitch_logits.astype(jnp.float32), axis=-1)
    a = -jnp.mean(jnp.take_along_axis(logprobs, pitch_y[:, None], axis=-1))

    def mse_pp(pred, y):
        p = pred.astype(jnp.float32)
        return jnp.mean((y.astype(jnp.float32) - p) ** 2
                        + 10.0 * jnp.maximum(-p, 0.0))

    b = mse_pp(step_pred, step_y)
    c = mse_pp(dur_pred, dur_y)
    w = weight.astype(jnp.float32)
    return a * w[0] + b * w[1] + c * w[2]


if __name__ == "__main__":
    key = jax.random.PRNGKey(0)
    weight = jnp.array([0.05, 1.0, 1.0], dtype=jnp.float32)

    # --- case 1: small f32, single tile, C=32 padded to 128 lanes -----------
    B, C = 24, 32
    k1, k2, k3, k4, k5, k6, k7 = jax.random.split(key, 7)
    pitch_logits = jax.random.normal(k1, (B, C), dtype=jnp.float32)
    pitch_y = jax.random.randint(k2, (B,), 0, C, dtype=jnp.int32)
    step_pred = jax.random.normal(k3, (B,), dtype=jnp.float32)
    step_y = jax.random.normal(k4, (B,), dtype=jnp.float32)
    dur_pred = jax.random.normal(k5, (B,), dtype=jnp.float32)
    dur_y = jax.random.normal(k6, (B,), dtype=jnp.float32)

    loss = my_loss(weight, pitch_logits, pitch_y, step_pred, step_y,
                   dur_pred, dur_y)
    loss = jax.block_until_ready(loss)
    ref = _reference(weight, pitch_logits, pitch_y, step_pred, step_y,
                     dur_pred, dur_y)
    assert jnp.allclose(loss, ref, rtol=1e-5, atol=1e-5), (loss, ref)

    # --- case 2: multi-tile, core-split grid with a clamped overhang tile ----
    B2, C2 = 300, 40
    j1, j2, j3, j4, j5, j6 = jax.random.split(k7, 6)
    pl2 = jax.random.normal(j1, (B2, C2), dtype=jnp.float32)
    py2 = jax.random.randint(j2, (B2,), 0, C2, dtype=jnp.int32)
    sp2 = jax.random.normal(j3, (B2,), dtype=jnp.float32)
    sy2 = jax.random.normal(j4, (B2,), dtype=jnp.float32)
    dp2 = jax.random.normal(j5, (B2,), dtype=jnp.float32)
    dy2 = jax.random.normal(j6, (B2,), dtype=jnp.float32)

    loss2 = my_loss(weight, pl2, py2, sp2, sy2, dp2, dy2, tile_b=128)
    loss2 = jax.block_until_ready(loss2)
    ref2 = _reference(weight, pl2, py2, sp2, sy2, dp2, dy2)
    assert jnp.allclose(loss2, ref2, rtol=1e-5, atol=1e-5), (loss2, ref2)

    print("KERNEL_OK")
</pallas_src>

<mosaic_0001>
module attributes {stable_mosaic.version = 11 : i64} {
  func.func @_loss_kernel(%arg0: i32, %arg1: i32, %arg2: memref<4x128xf32, #tpu.memory_space<vmem>>, %arg3: memref<128x1xi32, #tpu.memory_space<vmem>>, %arg4: memref<128x128xf32, #tpu.memory_space<vmem>>, %arg5: memref<1x8x128xf32, #tpu.memory_space<vmem>>, %arg6: memref<128x1xf32, #tpu.memory_space<vmem>>, %arg7: memref<2x128xf32, #tpu.memory_space<vmem>>) attributes {dimension_semantics = [#tpu.dimension_semantics<parallel>, #tpu.dimension_semantics<arbitrary>], iteration_bounds = array<i64: 1, 1>, scalar_prefetch = 0 : i64, scratch_operands = 2 : i64, tpu.core_type = #tpu.core_type<tc>, window_params = [{transform_indices = @transform_0, window_bounds = array<i64: 4, 128>}, {transform_indices = @transform_1, window_bounds = array<i64: 128, 1>}, {transform_indices = @transform_2, window_bounds = array<i64: 128, 128>}, {transform_indices = @transform_3, window_bounds = array<i64: 1, 8, 128>}]} {
    %c1_i32 = arith.constant 1 : i32
    %0 = arith.muli %arg0, %c1_i32 : i32
    %1 = arith.addi %0, %arg1 : i32
    %c0_i32 = arith.constant 0 : i32
    %2 = arith.cmpi eq, %arg1, %c0_i32 : i32
    %3 = arith.extui %2 : i1 to i32
    %c0_i32_0 = arith.constant 0 : i32
    %4 = arith.cmpi ne, %3, %c0_i32_0 : i32
    scf.if %4 {
      %cst_27 = arith.constant 0.000000e+00 : f32
      %59 = vector.broadcast %cst_27 : f32 to vector<128x1xf32>
      %c0_28 = arith.constant 0 : index
      %c0_29 = arith.constant 0 : index
      %60 = vector.load %arg6[%c0_28, %c0_29] : memref<128x1xf32, #tpu.memory_space<vmem>>, vector<128x1xf32>
      tpu.vector_store %arg6[%c0_28, %c0_29], %59 {strides = array<i32>} : memref<128x1xf32, #tpu.memory_space<vmem>>, vector<128x1xf32>,
      %cst_30 = arith.constant 0.000000e+00 : f32
      %61 = vector.broadcast %cst_30 : f32 to vector<2x128xf32>
      %c0_31 = arith.constant 0 : index
      %c0_32 = arith.constant 0 : index
      %62 = vector.load %arg7[%c0_31, %c0_32] : memref<2x128xf32, #tpu.memory_space<vmem>>, vector<2x128xf32>
      tpu.vector_store %arg7[%c0_31, %c0_32], %61 {strides = array<i32>} : memref<2x128xf32, #tpu.memory_space<vmem>>, vector<2x128xf32>,
    } else {
    }
    %c0 = arith.constant 0 : index
    %c0_1 = arith.constant 0 : index
    %5 = vector.load %arg4[%c0, %c0_1] : memref<128x128xf32, #tpu.memory_space<vmem>>, vector<128x128xf32>
    %cst = arith.constant dense<0xFF800000> : vector<128xf32>
    %6 = vector.multi_reduction <maximumf>, %5, %cst [1] : vector<128x128xf32> to vector<128xf32>
    %7 = vector.shape_cast %6 : vector<128xf32> to vector<128x1xf32>
    %8 = vector.broadcast %7 : vector<128x1xf32> to vector<128x128xf32>
    %9 = arith.subf %5, %8 : vector<128x128xf32>
    %10 = math.exp %9 : vector<128x128xf32>
    %cst_2 = arith.constant dense<0.000000e+00> : vector<128xf32>
    %11 = vector.multi_reduction <add>, %10, %cst_2 [1] : vector<128x128xf32> to vector<128xf32>
    %12 = vector.shape_cast %11 : vector<128xf32> to vector<128x1xf32>
    %13 = math.log %12 : vector<128x1xf32>
    %c0_3 = arith.constant 0 : index
    %c0_4 = arith.constant 0 : index
    %14 = vector.load %arg3[%c0_3, %c0_4] : memref<128x1xi32, #tpu.memory_space<vmem>>, vector<128x1xi32>
    %15 = tpu.iota {dimensions = array<i32: 1>} : vector<128x128xi32>
    %16 = vector.broadcast %14 : vector<128x1xi32> to vector<128x128xi32>
    %17 = arith.cmpi eq, %15, %16 : vector<128x128xi32>
    %cst_5 = arith.constant 0.000000e+00 : f32
    %18 = vector.broadcast %cst_5 : f32 to vector<128x128xf32>
    %19 = arith.select %17, %9, %18 : vector<128x128xi1>, vector<128x128xf32>
    %cst_6 = arith.constant dense<0.000000e+00> : vector<128xf32>
    %20 = vector.multi_reduction <add>, %19, %cst_6 [1] : vector<128x128xf32> to vector<128xf32>
    %21 = vector.shape_cast %20 : vector<128xf32> to vector<128x1xf32>
    %22 = arith.subf %13, %21 : vector<128x1xf32>
    %c128_i32 = arith.constant 128 : i32
    %23 = arith.muli %1, %c128_i32 : i32
    %24 = tpu.iota {dimensions = array<i32: 0>} : vector<128x1xi32>
    %25 = vector.broadcast %23 : i32 to vector<128x1xi32>
    %26 = arith.addi %25, %24 : vector<128x1xi32>
    %c0_7 = arith.constant 0 : index
    %c0_8 = arith.constant 0 : index
    %27 = vector.load %arg6[%c0_7, %c0_8] : memref<128x1xf32, #tpu.memory_space<vmem>>, vector<128x1xf32>
    %c24_i32 = arith.constant 24 : i32
    %28 = vector.broadcast %c24_i32 : i32 to vector<128x1xi32>
    %29 = arith.cmpi slt, %26, %28 : vector<128x1xi32>
    %cst_9 = arith.constant 0.000000e+00 : f32
    %30 = vector.broadcast %cst_9 : f32 to vector<128x1xf32>
    %31 = arith.select %29, %22, %30 : vector<128x1xi1>, vector<128x1xf32>
    %32 = arith.addf %27, %31 : vector<128x1xf32>
    %c0_10 = arith.constant 0 : index
    %c0_11 = arith.constant 0 : index
    %33 = vector.load %arg6[%c0_10, %c0_11] : memref<128x1xf32, #tpu.memory_space<vmem>>, vector<128x1xf32>
    tpu.vector_store %arg6[%c0_10, %c0_11], %32 {strides = array<i32>} : memref<128x1xf32, #tpu.memory_space<vmem>>, vector<128x1xf32>,
    %c0_12 = arith.constant 0 : index
    %c0_13 = arith.constant 0 : index
    %34 = vector.load %arg2[%c0_12, %c0_13] : memref<4x128xf32, #tpu.memory_space<vmem>>, vector<2x128xf32>
    %c2 = arith.constant 2 : index
    %c0_14 = arith.constant 0 : index
    %35 = vector.load %arg2[%c2, %c0_14] : memref<4x128xf32, #tpu.memory_space<vmem>>, vector<2x128xf32>
    %36 = arith.subf %35, %34 : vector<2x128xf32>
    %37 = arith.mulf %36, %36 : vector<2x128xf32>
    %cst_15 = arith.constant 0.000000e+00 : f32
    %38 = vector.broadcast %cst_15 : f32 to vector<2x128xf32>
    %39 = arith.subf %38, %34 : vector<2x128xf32>
    %cst_16 = arith.constant 0.000000e+00 : f32
    %40 = vector.broadcast %cst_16 : f32 to vector<2x128xf32>
    %41 = arith.maximumf %39, %40 : vector<2x128xf32>
    %cst_17 = arith.constant 1.000000e+01 : f32
    %42 = vector.broadcast %cst_17 : f32 to vector<2x128xf32>
    %43 = arith.mulf %42, %41 : vector<2x128xf32>
    %44 = arith.addf %37, %43 : vector<2x128xf32>
    %c128_i32_18 = arith.constant 128 : i32
    %45 = arith.muli %1, %c128_i32_18 : i32
    %46 = tpu.iota {dimensions = array<i32: 1>} : vector<2x128xi32>
    %47 = vector.broadcast %45 : i32 to vector<2x128xi32>
    %48 = arith.addi %47, %46 : vector<2x128xi32>
    %c0_19 = arith.constant 0 : index
    %c0_20 = arith.constant 0 : index
    %49 = vector.load %arg7[%c0_19, %c0_20] : memref<2x128xf32, #tpu.memory_space<vmem>>, vector<2x128xf32>
    %c24_i32_21 = arith.constant 24 : i32
    %50 = vector.broadcast %c24_i32_21 : i32 to vector<2x128xi32>
    %51 = arith.cmpi slt, %48, %50 : vector<2x128xi32>
    %cst_22 = arith.constant 0.000000e+00 : f32
    %52 = vector.broadcast %cst_22 : f32 to vector<2x128xf32>
    %53 = arith.select %51, %44, %52 : vector<2x128xi1>, vector<2x128xf32>
    %54 = arith.addf %49, %53 : vector<2x128xf32>
    %c0_23 = arith.constant 0 : index
    %c0_24 = arith.constant 0 : index
    %55 = vector.load %arg7[%c0_23, %c0_24] : memref<2x128xf32, #tpu.memory_space<vmem>>, vector<2x128xf32>
    tpu.vector_store %arg7[%c0_23, %c0_24], %54 {strides = array<i32>} : memref<2x128xf32, #tpu.memory_space<vmem>>, vector<2x128xf32>,
    %c0_i32_25 = arith.constant 0 : i32
    %56 = arith.cmpi eq, %arg1, %c0_i32_25 : i32
    %57 = arith.extui %56 : i1 to i32
    %c0_i32_26 = arith.constant 0 : i32
    %58 = arith.cmpi ne, %57, %c0_i32_26 : i32
    scf.if %58 {
      %c0_27 = arith.constant 0 : index
      %c0_28 = arith.constant 0 : index
      %59 = vector.load %arg6[%c0_27, %c0_28] : memref<128x1xf32, #tpu.memory_space<vmem>>, vector<128x1xf32>
      %60 = vector.shape_cast %59 : vector<128x1xf32> to vector<1x128x1xf32>
      %cst_29 = arith.constant dense<0.000000e+00> : vector<1xf32>
      %61 = vector.multi_reduction <add>, %60, %cst_29 [1, 2] : vector<1x128x1xf32> to vector<1xf32>
      %62 = vector.shape_cast %61 : vector<1xf32> to vector<1x1x1xf32>
      %63 = vector.extract %62[0, 0, 0] : f32 from vector<1x1x1xf32>
      %c0_30 = arith.constant 0 : index
      %c0_31 = arith.constant 0 : index
      %64 = vector.load %arg7[%c0_30, %c0_31] : memref<2x128xf32, #tpu.memory_space<vmem>>, vector<1x128xf32>
      %65 = vector.shape_cast %64 : vector<1x128xf32> to vector<1x1x128xf32>
      %cst_32 = arith.constant dense<0.000000e+00> : vector<1xf32>
      %66 = vector.multi_reduction <add>, %65, %cst_32 [1, 2] : vector<1x1x128xf32> to vector<1xf32>
      %67 = vector.shape_cast %66 : vector<1xf32> to vector<1x1x1xf32>
      %68 = vector.extract %67[0, 0, 0] : f32 from vector<1x1x1xf32>
      %c1 = arith.constant 1 : index
      %c0_33 = arith.constant 0 : index
      %69 = vector.load %arg7[%c1, %c0_33] : memref<2x128xf32, #tpu.memory_space<vmem>>, vector<1x128xf32>
      %70 = vector.shape_cast %69 : vector<1x128xf32> to vector<1x1x128xf32>
      %cst_34 = arith.constant dense<0.000000e+00> : vector<1xf32>
      %71 = vector.multi_reduction <add>, %70, %cst_34 [1, 2] : vector<1x1x128xf32> to vector<1xf32>
      %72 = vector.shape_cast %71 : vector<1xf32> to vector<1x1x1xf32>
      %73 = vector.extract %72[0, 0, 0] : f32 from vector<1x1x1xf32>
      %74 = tpu.iota {dimensions = array<i32: 2>} : vector<1x8x128xi32>
      %c0_i32_35 = arith.constant 0 : i32
      %75 = vector.broadcast %c0_i32_35 : i32 to vector<1x8x128xi32>
      %76 = arith.cmpi eq, %74, %75 : vector<1x8x128xi32>
      %cst_36 = arith.constant 0.000000e+00 : f32
      %77 = vector.broadcast %63 : f32 to vector<1x8x128xf32>
      %78 = vector.broadcast %cst_36 : f32 to vector<1x8x128xf32>
      %79 = arith.select %76, %77, %78 : vector<1x8x128xi1>, vector<1x8x128xf32>
      %c1_i32_37 = arith.constant 1 : i32
      %80 = vector.broadcast %c1_i32_37 : i32 to vector<1x8x128xi32>
      %81 = arith.cmpi eq, %74, %80 : vector<1x8x128xi32>
      %cst_38 = arith.constant 0.000000e+00 : f32
      %82 = vector.broadcast %68 : f32 to vector<1x8x128xf32>
      %83 = vector.broadcast %cst_38 : f32 to vector<1x8x128xf32>
      %84 = arith.select %81, %82, %83 : vector<1x8x128xi1>, vector<1x8x128xf32>
      %85 = arith.addf %79, %84 : vector<1x8x128xf32>
      %c2_i32 = arith.constant 2 : i32
      %86 = vector.broadcast %c2_i32 : i32 to vector<1x8x128xi32>
      %87 = arith.cmpi eq, %74, %86 : vector<1x8x128xi32>
      %cst_39 = arith.constant 0.000000e+00 : f32
      %88 = vector.broadcast %73 : f32 to vector<1x8x128xf32>
      %89 = vector.broadcast %cst_39 : f32 to vector<1x8x128xf32>
      %90 = arith.select %87, %88, %89 : vector<1x8x128xi1>, vector<1x8x128xf32>
      %91 = arith.addf %85, %90 : vector<1x8x128xf32>
      %c0_40 = arith.constant 0 : index
      %c0_41 = arith.constant 0 : index
      %c0_42 = arith.constant 0 : index
      %92 = vector.load %arg5[%c0_40, %c0_41, %c0_42] : memref<1x8x128xf32, #tpu.memory_space<vmem>>, vector<1x8x128xf32>
      tpu.vector_store %arg5[%c0_40, %c0_41, %c0_42], %91 {strides = array<i32>} : memref<1x8x128xf32, #tpu.memory_space<vmem>>, vector<1x8x128xf32>,
    } else {
    }
    return
  }
  func.func @transform_0(%arg0: i32, %arg1: i32) -> (i32, i32) {
    %c1_i32 = arith.constant 1 : i32
    %0 = arith.muli %arg0, %c1_i32 : i32
    %1 = arith.addi %0, %arg1 : i32
    %c0_i32 = arith.constant 0 : i32
    %2 = arith.minsi %1, %c0_i32 : i32
    %c0_i32_0 = arith.constant 0 : i32
    %c0_i32_1 = arith.constant 0 : i32
    return %c0_i32_0, %2 : i32, i32
  }
  func.func @transform_1(%arg0: i32, %arg1: i32) -> (i32, i32) {
    %c1_i32 = arith.constant 1 : i32
    %0 = arith.muli %arg0, %c1_i32 : i32
    %1 = arith.addi %0, %arg1 : i32
    %c0_i32 = arith.constant 0 : i32
    %2 = arith.minsi %1, %c0_i32 : i32
    %c0_i32_0 = arith.constant 0 : i32
    %c0_i32_1 = arith.constant 0 : i32
    return %2, %c0_i32_0 : i32, i32
  }
  func.func @transform_2(%arg0: i32, %arg1: i32) -> (i32, i32) {
    %c1_i32 = arith.constant 1 : i32
    %0 = arith.muli %arg0, %c1_i32 : i32
    %1 = arith.addi %0, %arg1 : i32
    %c0_i32 = arith.constant 0 : i32
    %2 = arith.minsi %1, %c0_i32 : i32
    %c0_i32_0 = arith.constant 0 : i32
    %c0_i32_1 = arith.constant 0 : i32
    return %2, %c0_i32_0 : i32, i32
  }
  func.func @transform_3(%arg0: i32, %arg1: i32) -> (i32, i32, i32) {
    %c0_i32 = arith.constant 0 : i32
    %c0_i32_0 = arith.constant 0 : i32
    %c0_i32_1 = arith.constant 0 : i32
    return %arg0, %c0_i32, %c0_i32_0 : i32, i32, i32
  }
}

</mosaic_0001>

<bundles_post_ra>
// kernel: tpu_custom_call.1
= control target key start
LH: loop header
LB: loop body
LE: loop exit
PB: predicated region body
PF: predicated region fallthrough
CT: control target
= control target key end

     0   :  { %8 = vsyncpa [#allocation5], 0  ;;  %s898_s0 = inlined_call_operand.hbm [shape: f32[4,128], index: 0, kind: input, shape index: {}]   ;;  %s899_s1 = inlined_call_operand.vmem [shape: s32[24,1], index: 1, kind: input, shape index: {}]   ;;  %s900_s2 = inlined_call_operand.vmem [shape: f32[24,128], index: 2, kind: input, shape index: {}]   ;;  %s901_s3 = inlined_call_operand.hbm [shape: f32[1,8,128], index: 3, kind: output, shape index: {}]  }
   0x1   :  { %9 = vsyncpa [#allocation6], 0  ;;  %s773_s12 = smov [#allocation4]   ;;  %s725_s16 = scalar_lea.hbm %s898_s0, 64 }
   0x2   :  { %s21_s13 = sshll.u32 %s773_s12, 4  ;;  %p726_p0 = scmp.ne.s32.totalorder %s898_s0, %s725_s16  ;;  %s22_s13 = int_to_ptr.vmem [resolvable:$true] %s21_s13 }
   0x3   :  { %p729_p1 = scmp.lt.u32.totalorder %s725_s16, %s898_s0 }
   0x5   :  { %p731_p2 = pnand %p729_p1, %p726_p0 }
   0x7   :  { %734 = shalt.err (!%p731_p2)
}
   0x8   :  { %s735_s21 = scalar_lea.vmem %s22_s13, 64  ;;  %p740_p4 = scmp.lt.s32.totalorder %s22_s13, %s22_s13 }
   0x9   :  { %p736_p3 = scmp.ne.s32.totalorder %s22_s13, %s735_s21  ;;  %p741_p5 = scmp.lt.s32.totalorder %s735_s21, %s735_s21 }
   0xb   :  { %p742_p6 = por %p741_p5, %p740_p4 }
   0xd   :  { %p743_p7 = pnand %p742_p6, %p736_p3 }
   0xf   :  { %746 = shalt.err (!%p743_p7)
}
  0x10   :  { %24 = dma.hbm_to_vmem [thread:$0]  %s898_s0, 64, %s22_s13, [#allocation5]  }
  0x11   :  { %769 = dma.done.wait [#allocation5], 64  }
  0x12   :  { %770 = vsyncadd [#allocation5], 4294967232  ;;  %v774_v0 = vmov 0   ;;  %v144_v1 = vld [vmem:[%s900_s2 + $0x10] sm:$0xff]  ;;  %v142_v2 = vld [vmem:[%s900_s2] sm:$0xff]  ;;  %v318_v16 = vlaneseq  ;;  %vm124_vm3 = vcmask 7168  }
  0x13   :  { %711 = vset.pattern.permute.xlu1 %v774_v0  ;;  %712 = vset.pattern.permute.xlu0 %v774_v0  ;;  %v143_v3 = vld [vmem:[%s900_s2 + $0x8] sm:$0xff]  ;;  %v302_v4 = vld [vmem:[%s899_s1] sm:$0xff]  ;;  %v304_v5 = vld [vmem:[%s899_s1 + $0x10] sm:$0xff]  ;;  %v775_v27 = vmov 0.0   ;;  %vm638_vm5 = vcmask 1040384   ;;  %s776_s9 = smov [#allocation7]  }
  0x14   :  { %162 = vmax.xlane.f32.xlu1 %v144_v1  ;;  %158 = vmax.xlane.f32.xlu0 %v142_v2  ;;  %v303_v6 = vld [vmem:[%s899_s1 + $0x8] sm:$0xff]  ;;  %v827_v18 = vand.u32 127, %v318_v16  ;;  %125 = vst.msk [vmem:[#allocation2] sm:$0xff] %vm124_vm3, %v775_v27  ;;  %126 = vst.msk [vmem:[#allocation2 + $0x8] sm:$0xff] %vm124_vm3, %v775_v27  ;;  %v564_v28 = vld [vmem:[#allocation4] sm:$0x3] }
  0x15   :  { %127 = vst.msk [vmem:[#allocation2 + $0x10] sm:$0xff] %vm124_vm3, %v775_v27  ;;  %128 = vst.msk [vmem:[#allocation2 + $0x18] sm:$0xff] %vm124_vm3, %v775_v27  ;;  %v565_v29 = vld [vmem:[#allocation4 + $0x2] sm:$0x3]  ;;  %v568_v31 = vsub.f32 0.0, %v564_v28  ;;  %s678_s10 = sshll.u32 %s776_s9, 4  ;;  %s679_s10 = int_to_ptr.vmem [resolvable:$true] %s678_s10 }
  0x16   :  { %129 = vst.msk [vmem:[#allocation2 + $0x20] sm:$0xff] %vm124_vm3, %v775_v27  ;;  %130 = vst.msk [vmem:[#allocation2 + $0x28] sm:$0xff] %vm124_vm3, %v775_v27  ;;  %v566_v30 = vsub.f32 %v565_v29, %v564_v28  ;;  %vm574_vm4 = vcmp.lt.s32.totalorder %v827_v18, 24  ;;  %vm660_vm6 = vcmp.eq.s32.totalorder %v827_v18, 0  ;;  %vm663_vm7 = vcmp.eq.s32.totalorder %v827_v18, 1  ;;  %s747_s11 = scalar_lea.vmem %s679_s10, 128  ;;  %p752_p9 = scmp.lt.s32.totalorder %s679_s10, %s679_s10 }
  0x17   :  { %131 = vst.msk [vmem:[#allocation2 + $0x30] sm:$0xff] %vm124_vm3, %v775_v27  ;;  %132 = vst.msk [vmem:[#allocation2 + $0x38] sm:$0xff] %vm124_vm3, %v775_v27  ;;  %v569_v39 = vmax.f32 %v568_v31, 0.0  ;;  %vm667_vm8 = vcmp.eq.s32.totalorder %v827_v18, 2  ;;  %p748_p8 = scmp.ne.s32.totalorder %s679_s10, %s747_s11  ;;  %p753_p10 = scmp.lt.s32.totalorder %s747_s11, %s747_s11 }
  0x18   :  { %160 = vmax.xlane.f32.xlu0 %v143_v3  ;;  %133 = vst.msk [vmem:[#allocation2 + $0x40] sm:$0xff] %vm124_vm3, %v775_v27  ;;  %134 = vst.msk [vmem:[#allocation2 + $0x48] sm:$0xff] %vm124_vm3, %v775_v27  ;;  %v567_v38 = vmul.f32 %v566_v30, %v566_v30 }
  0x19   :  { %135 = vst.msk [vmem:[#allocation2 + $0x50] sm:$0xff] %vm124_vm3, %v775_v27  ;;  %136 = vst.msk [vmem:[#allocation2 + $0x58] sm:$0xff] %vm124_vm3, %v775_v27  ;;  %v570_v46 = vmul.f32 10.0, %v569_v39  ;;  %p754_p11 = por %p753_p10, %p752_p9 }
  0x1a   :  { %137 = vst.msk [vmem:[#allocation2 + $0x60] sm:$0xff] %vm124_vm3, %v775_v27  ;;  %138 = vst.msk [vmem:[#allocation2 + $0x68] sm:$0xff] %vm124_vm3, %v775_v27 }
  0x1b   :  { %139 = vst.msk [vmem:[#allocation2 + $0x70] sm:$0xff] %vm124_vm3, %v775_v27  ;;  %140 = vst.msk [vmem:[#allocation2 + $0x78] sm:$0xff] %vm124_vm3, %v775_v27  ;;  %v571_v48 = vadd.f32 %v570_v46, %v567_v38  ;;  %v483_v61 = vld [vmem:[#allocation2] sm:$0xff]  ;;  %p755_p12 = pnand %p754_p11, %p748_p8 }
  0x1c   :  { %141 = vst [vmem:[#allocation3] sm:$0x3] %v775_v27  ;;  %v486_v32 = vld [vmem:[#allocation2 + $0x18] sm:$0xff] }
  0x1d   :  { %v487_v33 = vld [vmem:[#allocation2 + $0x20] sm:$0xff]  ;;  %v488_v34 = vld [vmem:[#allocation2 + $0x28] sm:$0xff]  ;;  %551 = vst.msk [vmem:[#allocation2 + $0x18] sm:$0xff] %vm124_vm3, %v486_v32  ;;  %v575_v50 = vsel %vm574_vm4, %v571_v48, 0.0 }
  0x1e   :  { %v489_v35 = vld [vmem:[#allocation2 + $0x30] sm:$0xff]  ;;  %v490_v36 = vld [vmem:[#allocation2 + $0x38] sm:$0xff]  ;;  %552 = vst.msk [vmem:[#allocation2 + $0x20] sm:$0xff] %vm124_vm3, %v487_v33  ;;  %553 = vst.msk [vmem:[#allocation2 + $0x28] sm:$0xff] %vm124_vm3, %v488_v34 }
  0x1f   :  { %v491_v37 = vld [vmem:[#allocation2 + $0x40] sm:$0xff]  ;;  %v492_v40 = vld [vmem:[#allocation2 + $0x48] sm:$0xff]  ;;  %554 = vst.msk [vmem:[#allocation2 + $0x30] sm:$0xff] %vm124_vm3, %v489_v35  ;;  %555 = vst.msk [vmem:[#allocation2 + $0x38] sm:$0xff] %vm124_vm3, %v490_v36 }
  0x20   :  { %v493_v41 = vld [vmem:[#allocation2 + $0x50] sm:$0xff]  ;;  %v494_v42 = vld [vmem:[#allocation2 + $0x58] sm:$0xff]  ;;  %556 = vst.msk [vmem:[#allocation2 + $0x40] sm:$0xff] %vm124_vm3, %v491_v37  ;;  %557 = vst.msk [vmem:[#allocation2 + $0x48] sm:$0xff] %vm124_vm3, %v492_v40 }
  0x21   :  { %v495_v43 = vld [vmem:[#allocation2 + $0x60] sm:$0xff]  ;;  %v496_v44 = vld [vmem:[#allocation2 + $0x68] sm:$0xff]  ;;  %558 = vst.msk [vmem:[#allocation2 + $0x50] sm:$0xff] %vm124_vm3, %v493_v41  ;;  %559 = vst.msk [vmem:[#allocation2 + $0x58] sm:$0xff] %vm124_vm3, %v494_v42 }
  0x22   :  { %v497_v45 = vld [vmem:[#allocation2 + $0x70] sm:$0xff]  ;;  %v498_v47 = vld [vmem:[#allocation2 + $0x78] sm:$0xff]  ;;  %560 = vst.msk [vmem:[#allocation2 + $0x60] sm:$0xff] %vm124_vm3, %v495_v43  ;;  %561 = vst.msk [vmem:[#allocation2 + $0x68] sm:$0xff] %vm124_vm3, %v496_v44 }
  0x23   :  { %562 = vst.msk [vmem:[#allocation2 + $0x70] sm:$0xff] %vm124_vm3, %v497_v45  ;;  %563 = vst.msk [vmem:[#allocation2 + $0x78] sm:$0xff] %vm124_vm3, %v498_v47  ;;  %v573_v49 = vld [vmem:[#allocation3] sm:$0x3] }
  0x24   :  { %v576_v51 = vadd.f32 %v575_v50, %v573_v49 }
  0x25   :  { %321 = vperm.xlu1 %711, %v302_v4  }
  0x26   :  { %577 = vst [vmem:[#allocation3] sm:$0x3] %v576_v51  ;;  %v588_v28 = vld [vmem:[#allocation2 + $0x38] sm:$0xff] }
  0x27   :  { %v589_v31 = vld [vmem:[#allocation2 + $0x40] sm:$0xff]  ;;  %v610_v33 = vsel %vm124_vm3, %v588_v28, 0.0  ;;  %v590_v34 = vld [vmem:[#allocation2 + $0x48] sm:$0xff] }
  0x28   :  { %v612_v36 = vsel %vm124_vm3, %v589_v31, 0.0  ;;  %v591_v37 = vld [vmem:[#allocation2 + $0x50] sm:$0xff]  ;;  %v614_v39 = vsel %vm124_vm3, %v590_v34, 0.0  ;;  %v592_v40 = vld [vmem:[#allocation2 + $0x58] sm:$0xff] }
  0x29   :  { %327 = vperm.xlu1 %711, %v304_v5   ;;  %v616_v42 = vsel %vm124_vm3, %v591_v37, 0.0  ;;  %v593_v43 = vld [vmem:[#allocation2 + $0x60] sm:$0xff]  ;;  %v618_v45 = vsel %vm124_vm3, %v592_v40, 0.0  ;;  %v594_v46 = vld [vmem:[#allocation2 + $0x68] sm:$0xff] }
  0x2a   :  { %v620_v48 = vsel %vm124_vm3, %v593_v43, 0.0  ;;  %v595_v49 = vld [vmem:[#allocation2 + $0x70] sm:$0xff]  ;;  %v622_v51 = vsel %vm124_vm3, %v594_v46, 0.0 }
  0x2d   :  { %v649_v52 = vld [vmem:[#allocation3 + $0x1] sm:$0x1] }
  0x2e   :  { %324 = vperm.xlu0 %712, %v303_v6   ;;  %v650_v53 = vsel %vm638_vm5, %v649_v52, 0.0  ;;  %v596_v52 = vld [vmem:[#allocation2 + $0x78] sm:$0xff] }
  0xa1   :  { %v163_v7 = vpop.xlane.xlu1 %162  ;;  %v159_v8 = vpop.xlane.xlu0 %158 }
  0xa2   :  { %v192_v9 = vsub.f32 %v144_v1, %v163_v7  ;;  %v190_v10 = vsub.f32 %v142_v2, %v159_v8  ;;  %v485_v7 = vld [vmem:[#allocation2 + $0x10] sm:$0xff] }
  0xa4   :  { %v206_v11 = vmul.f32 1.442695, %v190_v10  ;;  %v210_v12 = vmul.f32 1.442695, %v192_v9 }
  0xa5   :  { %v161_v13 = vpop.xlane.xlu0 %160  ;;  %v322_v20 = vpop.permute.xlu1 %321 }
  0xa6   :  { %v191_v14 = vsub.f32 %v143_v3, %v161_v13  ;;  %713 = vpow2.f32 %v206_v11  ;;  %vm368_vm0 = vcmp.eq.s32.totalorder %v827_v18, %v322_v20  ;;  %v484_v3 = vld [vmem:[#allocation2 + $0x8] sm:$0xff]  ;;  %v584_v13 = vld [vmem:[#allocation2 + $0x18] sm:$0xff] }
  0xa7   :  { %715 = vpow2.f32 %v210_v12  ;;  %v384_v23 = vsel %vm368_vm0, %v190_v10, 0.0 }
  0xa8   :  { %v208_v15 = vmul.f32 1.442695, %v191_v14 }
  0xa9   :  { %v328_v24 = vpop.permute.xlu1 %327 }
  0xaa   :  { %717 = vpow2.f32 %v208_v15  ;;  %vm370_vm2 = vcmp.eq.s32.totalorder %v827_v18, %v328_v24 }
  0xab   :  { %v386_v26 = vsel %vm370_vm2, %v192_v9, 0.0 }
  0xad   :  { %v325_v22 = vpop.permute.xlu0 %324 }
  0xae   :  { %vm369_vm1 = vcmp.eq.s32.totalorder %v827_v18, %v325_v22  ;;  %v586_v22 = vld [vmem:[#allocation2 + $0x28] sm:$0xff] }
  0xaf   :  { %v385_v25 = vsel %vm369_vm1, %v191_v14, 0.0  ;;  %v606_v27 = vsel %vm124_vm3, %v586_v22, 0.0 }
  0xb0   :  { %v714_v17 = vpop.eup %713 }
  0xb1   :  { %238 = vadd.xlane.f32.xlu1 %v714_v17  ;;  %v716_v19 = vpop.eup %715  ;;  %v585_v17 = vld [vmem:[#allocation2 + $0x20] sm:$0xff] }
  0xb2   :  { %v604_v24 = vsel %vm124_vm3, %v585_v17, 0.0 }
  0xb4   :  { %v718_v21 = vpop.eup %717 }
  0xb5   :  { %240 = vadd.xlane.f32.xlu0 %v718_v21  ;;  %242 = vadd.xlane.f32.xlu1 %v716_v19  ;;  %v602_v21 = vsel %vm124_vm3, %v584_v13, 0.0 }
  0xb9   :  { %400 = vadd.xlane.f32.xlu1 %v384_v23  ;;  %651 = vadd.xlane.f32.xlu0 %v650_v53 }
  0xbd   :  { %402 = vadd.xlane.f32.xlu1 %v385_v25  ;;  %v587_v25 = vld [vmem:[#allocation2 + $0x30] sm:$0xff] }
  0xbe   :  { %v608_v30 = vsel %vm124_vm3, %v587_v25, 0.0 }
  0xc1   :  { %404 = vadd.xlane.f32.xlu1 %v386_v26 }
 0x13e   :  { %v239_v54 = vpop.xlane.xlu1 %238 }
 0x13f   :  { %719 = vlog2.f32 %v239_v54  ;;  %v624_v54 = vsel %vm124_vm3, %v595_v49, 0.0 }
 0x142   :  { %v241_v55 = vpop.xlane.xlu0 %240  ;;  %v243_v56 = vpop.xlane.xlu1 %242 }
 0x143   :  { %721 = vlog2.f32 %v241_v55 }
 0x144   :  { %723 = vlog2.f32 %v243_v56  ;;  %v626_v56 = vsel %vm124_vm3, %v596_v52, 0.0 }
 0x146   :  { %v401_v57 = vpop.xlane.xlu1 %400 }
 0x149   :  { %v720_v58 = vpop.eup %719 }
 0x14a   :  { %v271_v59 = vmul.f32 0.6931472, %v720_v58  ;;  %v403_v60 = vpop.xlane.xlu1 %402 }
 0x14c   :  { %v432_v63 = vsub.f32 %v271_v59, %v401_v57  ;;  %v637_v59 = vld [vmem:[#allocation3] sm:$0x1] }
 0x14d   :  { %v722_v62 = vpop.eup %721 }
 0x14e   :  { %v724_v0 = vpop.eup %723  ;;  %v273_v1 = vmul.f32 0.6931472, %v722_v62  ;;  %v531_v2 = vadd.f32 %v483_v61, %v432_v63  ;;  %v405_v5 = vpop.xlane.xlu1 %404 }
 0x14f   :  { %v275_v4 = vmul.f32 0.6931472, %v724_v0  ;;  %v652_v61 = vpop.xlane.xlu0 %651 }
 0x150   :  { %v433_v6 = vsub.f32 %v273_v1, %v403_v60  ;;  %548 = vst.msk [vmem:[#allocation2] sm:$0xff] %vm124_vm3, %v531_v2  ;;  %v639_v60 = vsel %vm638_vm5, %v637_v59, 0.0  ;;  %v653_v62 = vrot.slane %v652_v61, 4 }
 0x151   :  { %v434_v8 = vsub.f32 %v275_v4, %v405_v5 }
 0x152   :  { %v532_v9 = vadd.f32 %v484_v3, %v433_v6  ;;  %v654_v63 = vadd.f32 %v653_v62, %v652_v61 }
 0x153   :  { %v533_v10 = vadd.f32 %v485_v7, %v434_v8 }
 0x154   :  { %549 = vst.msk [vmem:[#allocation2 + $0x8] sm:$0xff] %vm124_vm3, %v532_v9  ;;  %v655_v3 = vrot.slane %v654_v63, 2 }
 0x155   :  { %550 = vst.msk [vmem:[#allocation2 + $0x10] sm:$0xff] %vm124_vm3, %v533_v10 }
 0x156   :  { %v656_v9 = vadd.f32 %v655_v3, %v654_v63 }
 0x157   :  { %v581_v11 = vld [vmem:[#allocation2] sm:$0xff] }
 0x158   :  { %v597_v15 = vsel %vm124_vm3, %v581_v11, 0.0 }
 0x15b   :  { %v582_v12 = vld [vmem:[#allocation2 + $0x8] sm:$0xff] }
 0x15c   :  { %v583_v14 = vld [vmem:[#allocation2 + $0x10] sm:$0xff]  ;;  %v598_v16 = vsel %vm124_vm3, %v582_v12, 0.0 }
 0x15d   :  { %v599_v19 = vadd.f32 %v598_v16, %v597_v15  ;;  %v600_v20 = vsel %vm124_vm3, %v583_v14, 0.0  ;;  %v657_v14 = vrot.slane %v656_v9, 1 }
 0x15f   :  { %v601_v23 = vadd.f32 %v600_v20, %v599_v19  ;;  %v658_v17 = vadd.f32 %v657_v14, %v656_v9 }
 0x161   :  { %v603_v26 = vadd.f32 %v602_v21, %v601_v23 }
 0x163   :  { %v605_v29 = vadd.f32 %v604_v24, %v603_v26 }
 0x165   :  { %v607_v32 = vadd.f32 %v606_v27, %v605_v29 }
 0x167   :  { %v609_v35 = vadd.f32 %v608_v30, %v607_v32 }
 0x169   :  { %v611_v38 = vadd.f32 %v610_v33, %v609_v35 }
 0x16b   :  { %v613_v41 = vadd.f32 %v612_v36, %v611_v38 }
 0x16d   :  { %v615_v44 = vadd.f32 %v614_v39, %v613_v41 }
 0x16f   :  { %v617_v47 = vadd.f32 %v616_v42, %v615_v44 }
 0x171   :  { %v619_v50 = vadd.f32 %v618_v45, %v617_v47 }
 0x173   :  { %v621_v53 = vadd.f32 %v620_v48, %v619_v50 }
 0x175   :  { %v623_v55 = vadd.f32 %v622_v51, %v621_v53 }
 0x177   :  { %v625_v57 = vadd.f32 %v624_v54, %v623_v55 }
 0x179   :  { %v627_v58 = vadd.f32 %v626_v56, %v625_v57 }
 0x17b   :  { %628 = vadd.xlane.f32.xlu1 %v627_v58 }
 0x17f   :  { %640 = vadd.xlane.f32.xlu1 %v639_v60 }
 0x208   :  { %v629_v0 = vpop.xlane.xlu1 %628 }
 0x209   :  { %v630_v1 = vrot.slane %v629_v0, 4 }
 0x20b   :  { %v631_v2 = vadd.f32 %v630_v1, %v629_v0 }
 0x20c   :  { %v641_v4 = vpop.xlane.xlu1 %640 }
 0x20d   :  { %v632_v5 = vrot.slane %v631_v2, 2  ;;  %v642_v6 = vrot.slane %v641_v4, 4 }
 0x20f   :  { %v643_v7 = vadd.f32 %v642_v6, %v641_v4  ;;  %v633_v8 = vadd.f32 %v632_v5, %v631_v2 }
 0x211   :  { %v644_v10 = vrot.slane %v643_v7, 2  ;;  %v634_v11 = vrot.slane %v633_v8, 1 }
 0x213   :  { %v645_v12 = vadd.f32 %v644_v10, %v643_v7  ;;  %v635_v13 = vadd.f32 %v634_v11, %v633_v8 }
 0x215   :  { %701 = vpush %v635_v13  ;;  %v646_v15 = vrot.slane %v645_v12, 1 }
 0x217   :  { %v647_v16 = vadd.f32 %v646_v15, %v645_v12 }
 0x219   :  { %703 = vpush %v647_v16 }
 0x21a   :  { %705 = vpush %v658_v17 }
 0x246   :  { %s702_s1 = spop %701 }
 0x247   :  { %v661_v19 = vstv %s702_s1 }
 0x248   :  { %v662_v21 = vsel %vm660_vm6, %v661_v19, 0.0 }
 0x24a   :  { %s704_s2 = spop %703 }
 0x24b   :  { %v664_v20 = vstv %s704_s2  ;;  %s706_s8 = spop %705 }
 0x24c   :  { %v665_v22 = vsel %vm663_vm7, %v664_v20, 0.0  ;;  %v668_v23 = vstv %s706_s8 }
 0x24d   :  { %v666_v24 = vadd.f32 %v665_v22, %v662_v21  ;;  %v669_v25 = vsel %vm667_vm8, %v668_v23, 0.0 }
 0x24f   :  { %v670_v26 = vadd.f32 %v669_v25, %v666_v24 }
 0x251   :  { %671 = vst [vmem:[#allocation7] sm:$0xff] %v670_v26 }
 0x252   :  { %758 = shalt.err (!%p755_p12)
}
 0x253   :  { %s759_s14 = scalar_lea.hbm %s901_s3, 128 }
 0x254   :  { %p760_p13 = scmp.ne.s32.totalorder %s901_s3, %s759_s14  ;;  %p763_p0 = scmp.lt.u32.totalorder %s759_s14, %s901_s3 }
 0x256   :  { %p765_p1 = pnand %p763_p0, %p760_p13 }
 0x258   :  { %768 = shalt.err (!%p765_p1)
}
 0x259   :  { %681 = dma.vmem_to_hbm [thread:$0]  %s679_s10, 128, %s901_s3, [#allocation6]  }
 0x25a   :  { %771 = dma.done.wait [#allocation6], 128  }
 0x25b   :  { %772 = vsyncadd [#allocation6], 4294967168 }
 0x25c   :  { %685 = vsyncpa [#allocation5], 1 }
 0x25d   :  { %686 = vsyncpa [#allocation6], 1 }

</bundles_post_ra>
